<compile_context>
chip_gen: v6e
topology: v6e:2x2x1
jax: 0.10.0
libtpu: 0.0.40
codegen_flags: <defaults>
</compile_context>

<pallas_src>
import numpy as np
import jax
import jax.numpy as jnp
from jax.experimental import pallas as pl
from jax.experimental.pallas import tpu as pltpu

# ----------------------------------------------------------------------------------
# Hyper-parameters (small, consistent with the Decoder the Reshape lives in):
#   Decoder(datalength=64, conv_layer_sizes=[[4,2],[2,2],[1,1]],
#           fc_layer_sizes=[32,64], latent_size=8, conditional=True, num_labels=10)
# ----------------------------------------------------------------------------------
BATCH        = 2
LATENT       = 8
NUM_LABELS   = 10
CONDITIONAL  = True
FC_SIZES     = [32, 64]
CONV_SIZES   = [[4, 2], [2, 2], [1, 1]]   # (channels, stride) per layer spec
KERNEL_SIZE  = 6
PADDING      = 2
DATALENGTH   = 64

IN_SIZE = LATENT + (NUM_LABELS if CONDITIONAL else 0)          # 18
C0      = CONV_SIZES[0][0]                                     # 4
L0      = FC_SIZES[-1] // C0                                   # 16

# packed weight slab layout: (64 rows, 384 lanes), each section starts on a
# 128-lane tile boundary
SLAB_ROWS   = 64
SLAB_COLS   = 384
M_COL       = 0      # cols   0:128 : fused conv matrix m (64,64), zero-padded to 128 lanes
W1_COL      = 128    # cols 128:192 : rows 0:32 = w1 (32,64), row 32 = b1
W0_COL      = 256    # cols 256:288 : rows 0:8 = w0[z part], rows 8:18 = w0[label rows] + b0
OUT_LANES   = 128    # lane-dense output width


def convT_out_len(lin, stride):
    return (lin - 1) * stride - 2 * PADDING + KERNEL_SIZE


def convT_dense_matrix(w, lin, stride):
    """Expand a ConvTranspose1d weight (Cin, Cout, K) into a dense
    (Cin*Lin, Cout*Lout) matrix acting on channel-major flattened activations.
    y[b, co, j] = sum_{ci,k} x[b, ci, i] * w[ci, co, k]  with  j = i*stride - pad + k.
    """
    w = np.asarray(w, dtype=np.float32)
    cin, cout, K = w.shape
    lout = convT_out_len(lin, stride)
    i = np.arange(lin)[:, None]                 # (Lin, 1)
    j = np.arange(lout)[None, :]                # (1, Lout)
    k = j - i * stride + PADDING                # (Lin, Lout)
    valid = (k >= 0) & (k < K)
    kc = np.clip(k, 0, K - 1)
    m4 = w[:, :, kc]                            # (Cin, Cout, Lin, Lout)
    m4 = m4 * valid[None, None, :, :]
    m4 = np.transpose(m4, (0, 2, 1, 3))         # (Cin, Lin, Cout, Lout)
    return np.ascontiguousarray(m4.reshape(cin * lin, cout * lout))


# ----------------------------------------------------------------------------------
# Pallas kernel: fused MLP + (pre-fused) ConvTranspose1d chain.
#   c_ref    : (B, 1)  int32 labels (VMEM)
#   z_ref    : (B, LATENT) f32 latent codes (VMEM)
#   slab_ref : (64, 384) f32 packed weights (VMEM)  -- see layout constants above
#   out_ref  : (B, 128) f32 lane-dense output; columns 0:64 are the result
# Everything (params + activations ~ 100 KB) fits trivially in VMEM on v5e/v6e/v7x.
# ----------------------------------------------------------------------------------
def decoder_kernel(c_ref, z_ref, slab_ref, out_ref):
    z = z_ref[...]                                   # (B, 8)
    B = z.shape[0]

    # one-hot built in-kernel from the integer labels (no gather, no concat)
    lab = c_ref[...]                                 # (B, 1) int32
    oh = (jax.lax.broadcasted_iota(jnp.int32, (B, NUM_LABELS), 1)
          == lab).astype(jnp.float32)                # (B, 10)

    # FC0: z @ W0_z + oh @ (W0_lab + b0), then ReLU   (b0 folded into label rows)
    w0z = slab_ref[0:LATENT, W0_COL:W0_COL + FC_SIZES[0]]                        # (8, 32)
    w0l = slab_ref[LATENT:LATENT + NUM_LABELS, W0_COL:W0_COL + FC_SIZES[0]]      # (10, 32)
    h = (jnp.dot(z, w0z, preferred_element_type=jnp.float32)
         + jnp.dot(oh, w0l, preferred_element_type=jnp.float32))
    h = jnp.maximum(h, 0.0)

    # FC1: h @ W1 + b1 (bias packed as row 32 of the slab section), then Sigmoid
    w1 = slab_ref[0:FC_SIZES[0], W1_COL:W1_COL + FC_SIZES[1]]                    # (32, 64)
    b1 = slab_ref[FC_SIZES[0]:FC_SIZES[0] + 1, W1_COL:W1_COL + FC_SIZES[1]]      # (1, 64)
    h = jnp.dot(h, w1, preferred_element_type=jnp.float32) + b1
    h = 0.5 * jnp.tanh(0.5 * h) + 0.5                # sigmoid via one EUP tanh

    # torch.reshape(x, (-1, C0, L0)) == identity on the channel-major flat buffer.
    # Fused ConvTranspose1d(4->2) . ConvTranspose1d(2->1) as ONE dense matmul.
    # m is zero-padded to 128 lanes inside the slab -> lane-dense (B, 128) store.
    m_pad = slab_ref[0:FC_SIZES[1], M_COL:M_COL + OUT_LANES]                     # (64, 128)
    out_ref[...] = jnp.dot(h, m_pad, preferred_element_type=jnp.float32)


def decoder_forward(z, c_idx, params):
    assert CONDITIONAL, "kernel path implemented for the conditional decoder"
    B = z.shape[0]
    vmem = pl.BlockSpec(memory_space=pltpu.MemorySpace.VMEM)
    out_padded = pl.pallas_call(
        decoder_kernel,
        out_shape=jax.ShapeDtypeStruct((B, OUT_LANES), jnp.float32),
        in_specs=[vmem, vmem, vmem],
        out_specs=vmem,
    )(c_idx.astype(jnp.int32).reshape(B, 1), z, params["slab"])
    # drop the lane padding; final torch.reshape(x, (-1, 1, datalength)) is a view
    return out_padded[:, :DATALENGTH].reshape(-1, 1, DATALENGTH)


# ----------------------------------------------------------------------------------
# Deterministic parameter init (+ one-time host-side packing) and a pure-numpy
# reference for verification.
# ----------------------------------------------------------------------------------
def init_params(key):
    ks = jax.random.split(key, 6)
    w0  = jax.random.normal(ks[0], (IN_SIZE, FC_SIZES[0]), jnp.float32) * 0.2
    b0  = jax.random.normal(ks[1], (1, FC_SIZES[0]), jnp.float32) * 0.1
    w1  = jax.random.normal(ks[2], (FC_SIZES[0], FC_SIZES[1]), jnp.float32) * 0.2
    b1  = jax.random.normal(ks[3], (1, FC_SIZES[1]), jnp.float32) * 0.1
    cw0 = jax.random.normal(ks[4], (CONV_SIZES[0][0], CONV_SIZES[1][0], KERNEL_SIZE),
                            jnp.float32) * 0.3
    cw1 = jax.random.normal(ks[5], (CONV_SIZES[1][0], CONV_SIZES[2][0], KERNEL_SIZE),
                            jnp.float32) * 0.3

    w0_np, b0_np = np.asarray(w0), np.asarray(b0)
    w1_np, b1_np = np.asarray(w1), np.asarray(b1)

    # fused ConvTranspose chain: exact because no nonlinearity between the two layers
    m1 = convT_dense_matrix(cw0, L0, stride=CONV_SIZES[0][1])                  # (64, 64)
    m2 = convT_dense_matrix(cw1, convT_out_len(L0, CONV_SIZES[0][1]),
                            stride=CONV_SIZES[1][1])                           # (64, 64)
    m = m1 @ m2                                                                # (64, 64)

    # ---- single packed slab (one-time host glue) ----
    slab = np.zeros((SLAB_ROWS, SLAB_COLS), np.float32)
    slab[0:FC_SIZES[1], M_COL:M_COL + DATALENGTH] = m            # lanes 64:128 stay zero
    slab[0:FC_SIZES[0], W1_COL:W1_COL + FC_SIZES[1]] = w1_np
    slab[FC_SIZES[0],   W1_COL:W1_COL + FC_SIZES[1]] = b1_np[0]
    slab[0:LATENT, W0_COL:W0_COL + FC_SIZES[0]] = w0_np[0:LATENT, :]
    # exactly one label row is selected per sample, so folding +b0 per row is exact
    slab[LATENT:LATENT + NUM_LABELS, W0_COL:W0_COL + FC_SIZES[0]] = w0_np[LATENT:, :] + b0_np

    return {"w0": w0, "b0": b0, "w1": w1, "b1": b1, "cw0": cw0, "cw1": cw1,
            "slab": jnp.asarray(slab)}


def conv_transpose1d_ref(x, w, stride):
    bsz, cin, lin = x.shape
    _, cout, K = w.shape
    lout = convT_out_len(lin, stride)
    y = np.zeros((bsz, cout, lout), dtype=np.float32)
    for b in range(bsz):
        for ci in range(cin):
            for i in range(lin):
                for co in range(cout):
                    for k in range(K):
                        j = i * stride - PADDING + k
                        if 0 <= j < lout:
                            y[b, co, j] += x[b, ci, i] * w[ci, co, k]
    return y


def reference_forward(z, c_idx, params):
    z = np.asarray(z); c_idx = np.asarray(c_idx)
    oh = np.zeros((z.shape[0], NUM_LABELS), np.float32)
    oh[np.arange(z.shape[0]), c_idx] = 1.0
    x = np.concatenate([z, oh], axis=-1)
    x = x @ np.asarray(params["w0"]) + np.asarray(params["b0"])
    x = np.maximum(x, 0.0)
    x = x @ np.asarray(params["w1"]) + np.asarray(params["b1"])
    x = 1.0 / (1.0 + np.exp(-x))
    x = x.reshape(-1, C0, L0)                                    # the Reshape module
    x = conv_transpose1d_ref(x, np.asarray(params["cw0"]), stride=CONV_SIZES[0][1])
    x = conv_transpose1d_ref(x, np.asarray(params["cw1"]), stride=CONV_SIZES[1][1])
    return x.reshape(-1, 1, DATALENGTH)


if __name__ == "__main__":
    key = jax.random.PRNGKey(0)
    k_p, k_z, k_c = jax.random.split(key, 3)
    params = init_params(k_p)
    z = jax.random.normal(k_z, (BATCH, LATENT), jnp.float32)
    c = jax.random.randint(k_c, (BATCH,), 0, NUM_LABELS)

    out = decoder_forward(z, c, params)
    out = jax.block_until_ready(out)

    ref = reference_forward(z, c, params)
    assert out.shape == (BATCH, 1, DATALENGTH), out.shape
    np.testing.assert_allclose(np.asarray(out), ref, rtol=2e-2, atol=5e-3)
    print("KERNEL_OK")
</pallas_src>

<mosaic_0001>
module attributes {stable_mosaic.version = 11 : i64} {
  func.func @decoder_kernel(%arg0: memref<2x1xi32, #tpu.memory_space<vmem>>, %arg1: memref<2x8xf32, #tpu.memory_space<vmem>>, %arg2: memref<64x384xf32, #tpu.memory_space<vmem>>, %arg3: memref<2x128xf32, #tpu.memory_space<vmem>>) attributes {dimension_semantics = [], scalar_prefetch = 0 : i64, scratch_operands = 0 : i64, tpu.core_type = #tpu.core_type<tc>} {
    %c0 = arith.constant 0 : index
    %c0_0 = arith.constant 0 : index
    %0 = vector.load %arg1[%c0, %c0_0] : memref<2x8xf32, #tpu.memory_space<vmem>>, vector<2x8xf32>
    %c0_1 = arith.constant 0 : index
    %c0_2 = arith.constant 0 : index
    %1 = vector.load %arg0[%c0_1, %c0_2] : memref<2x1xi32, #tpu.memory_space<vmem>>, vector<2x1xi32>
    %2 = tpu.iota {dimensions = array<i32: 1>} : vector<2x10xi32>
    %3 = vector.broadcast %1 : vector<2x1xi32> to vector<2x10xi32>
    %4 = arith.cmpi eq, %2, %3 : vector<2x10xi32>
    %5 = arith.extui %4 : vector<2x10xi1> to vector<2x10xi32>
    %6 = arith.sitofp %5 : vector<2x10xi32> to vector<2x10xf32>
    %c0_3 = arith.constant 0 : index
    %c256 = arith.constant 256 : index
    %7 = vector.load %arg2[%c0_3, %c256] : memref<64x384xf32, #tpu.memory_space<vmem>>, vector<8x32xf32>
    %c8 = arith.constant 8 : index
    %c256_4 = arith.constant 256 : index
    %8 = vector.load %arg2[%c8, %c256_4] : memref<64x384xf32, #tpu.memory_space<vmem>>, vector<10x32xf32>
    %cst = arith.constant dense<0.000000e+00> : vector<2x32xf32>
    %9 = tpu.matmul %0, %7, %cst {dimension_numbers = #tpu.dot_dimension_numbers<[1], [0], [0], [1], [0, 0, 1, 1], [], []>} : vector<2x8xf32>, vector<8x32xf32>, vector<2x32xf32> -> vector<2x32xf32>
    %cst_5 = arith.constant dense<0.000000e+00> : vector<2x32xf32>
    %10 = tpu.matmul %6, %8, %cst_5 {dimension_numbers = #tpu.dot_dimension_numbers<[1], [0], [0], [1], [0, 0, 1, 1], [], []>} : vector<2x10xf32>, vector<10x32xf32>, vector<2x32xf32> -> vector<2x32xf32>
    %11 = arith.addf %9, %10 : vector<2x32xf32>
    %cst_6 = arith.constant 0.000000e+00 : f32
    %12 = vector.broadcast %cst_6 : f32 to vector<2x32xf32>
    %13 = arith.maximumf %11, %12 : vector<2x32xf32>
    %c0_7 = arith.constant 0 : index
    %c128 = arith.constant 128 : index
    %14 = vector.load %arg2[%c0_7, %c128] : memref<64x384xf32, #tpu.memory_space<vmem>>, vector<32x64xf32>
    %c32 = arith.constant 32 : index
    %c128_8 = arith.constant 128 : index
    %15 = vector.load %arg2[%c32, %c128_8] : memref<64x384xf32, #tpu.memory_space<vmem>>, vector<1x64xf32>
    %cst_9 = arith.constant dense<0.000000e+00> : vector<2x64xf32>
    %16 = tpu.matmul %13, %14, %cst_9 {dimension_numbers = #tpu.dot_dimension_numbers<[1], [0], [0], [1], [0, 0, 1, 1], [], []>} : vector<2x32xf32>, vector<32x64xf32>, vector<2x64xf32> -> vector<2x64xf32>
    %17 = vector.broadcast %15 : vector<1x64xf32> to vector<2x64xf32>
    %18 = arith.addf %16, %17 : vector<2x64xf32>
    %cst_10 = arith.constant 5.000000e-01 : f32
    %19 = vector.broadcast %cst_10 : f32 to vector<2x64xf32>
    %20 = arith.mulf %19, %18 : vector<2x64xf32>
    %21 = math.tanh %20 : vector<2x64xf32>
    %cst_11 = arith.constant 5.000000e-01 : f32
    %22 = vector.broadcast %cst_11 : f32 to vector<2x64xf32>
    %23 = arith.mulf %22, %21 : vector<2x64xf32>
    %cst_12 = arith.constant 5.000000e-01 : f32
    %24 = vector.broadcast %cst_12 : f32 to vector<2x64xf32>
    %25 = arith.addf %23, %24 : vector<2x64xf32>
    %c0_13 = arith.constant 0 : index
    %c0_14 = arith.constant 0 : index
    %26 = vector.load %arg2[%c0_13, %c0_14] : memref<64x384xf32, #tpu.memory_space<vmem>>, vector<64x128xf32>
    %cst_15 = arith.constant dense<0.000000e+00> : vector<2x128xf32>
    %27 = tpu.matmul %25, %26, %cst_15 {dimension_numbers = #tpu.dot_dimension_numbers<[1], [0], [0], [1], [0, 0, 1, 1], [], []>} : vector<2x64xf32>, vector<64x128xf32>, vector<2x128xf32> -> vector<2x128xf32>
    %c0_16 = arith.constant 0 : index
    %c0_17 = arith.constant 0 : index
    %28 = vector.load %arg3[%c0_16, %c0_17] : memref<2x128xf32, #tpu.memory_space<vmem>>, vector<2x128xf32>
    tpu.vector_store %arg3[%c0_16, %c0_17], %27 {strides = array<i32>} : memref<2x128xf32, #tpu.memory_space<vmem>>, vector<2x128xf32>,
    return
  }
}

</mosaic_0001>

<bundles_post_ra>
// kernel: tpu_custom_call.1
= control target key start
LH: loop header
LB: loop body
LE: loop exit
PB: predicated region body
PF: predicated region fallthrough
CT: control target
= control target key end

     0   :  { %8 = vsyncpa [#allocation3], 0  ;;  %s560_s0 = inlined_call_operand.vmem [shape: s32[2,1], index: 0, kind: input, shape index: {}]   ;;  %s561_s1 = inlined_call_operand.vmem [shape: f32[2,8], index: 1, kind: input, shape index: {}]   ;;  %s562_s2 = inlined_call_operand.hbm [shape: f32[64,384], index: 2, kind: input, shape index: {}]   ;;  %s563_s3 = inlined_call_operand.hbm [shape: f32[2,128], index: 3, kind: output, shape index: {}]  }
   0x1   :  { %9 = vsyncpa [#allocation4], 0  ;;  %s497_s12 = smov [#allocation2]  }
   0x2   :  { %s19_s13 = sshll.u32 %s497_s12, 4  ;;  %s20_s13 = int_to_ptr.vmem [resolvable:$true] %s19_s13 }
   0x3   :  { %s461_s14 = scalar_lea.vmem %s20_s13, 3072  ;;  %p466_p1 = scmp.lt.s32.totalorder %s20_s13, %s20_s13 }
   0x4   :  { %p462_p0 = scmp.ne.s32.totalorder %s20_s13, %s461_s14  ;;  %p467_p2 = scmp.lt.s32.totalorder %s461_s14, %s461_s14 }
   0x6   :  { %p468_p3 = por %p467_p2, %p466_p1 }
   0x8   :  { %p469_p4 = pnand %p468_p3, %p462_p0 }
   0xa   :  { %472 = shalt.err (!%p469_p4)
}
   0xb   :  { %s498_s15 = smov 384   ;;  %s499_s16 = smov 24  }
   0xc   :  { %25 = dma.hbm_to_vmem [thread:$0]  %s562_s2, 3072, %s20_s13, [#allocation3], %s498_s15, %s498_s15, %s499_s16  }
   0xd   :  { %493 = dma.done.wait [#allocation3], 3072  }
   0xe   :  { %494 = vsyncadd [#allocation3], 4294964224  ;;  %v500_v0 = vmov 0   ;;  %v501_v1 = vmov 0.0   ;;  %vm46_vm0 = vcmask 1041408   ;;  %vm502_vm1 = vmmov 0  }
   0xf   :  { %450 = vset.pattern.permute.xlu0 %v500_v0  ;;  %401 = vmatprep.subr.mxu1 %v501_v1  ;;  %v30_v2 = vld [vmem:[%s560_s0] sm:$0x3]  ;;  %v40_v4 = vld [vmem:[#allocation2 + $0x28] sm:$0xff]  ;;  %v31_v5 = vlaneseq  ;;  %vm42_vm2 = vcmask 80896   ;;  %v39_v8 = vld [vmem:[#allocation2 + $0x10] sm:$0xff]  ;;  %vm120_vm4 = vcmask 64512  }
  0x10   :  { %424 = vmatprep.subr.mxu0 %v501_v1  ;;  %405 = vmatprep.mubr.msk.f32.mxu1 %vm502_vm1, %v501_v1  ;;  %v41_v3 = vld [vmem:[#allocation2 + $0x40] sm:$0x3]  ;;  %v198_v11 = vld [vmem:[#allocation2 + $0x50] sm:$0xff]  ;;  %v197_v12 = vld [vmem:[#allocation2 + $0x38] sm:$0xff]  ;;  %vm200_vm5 = vcmask 261120   ;;  %vm286_vm6 = vcmask 523264  }
  0x11   :  { %440 = vmatprep.mubr.msk.f32.mxu0 %vm502_vm1, %v501_v1  ;;  %34 = vperm.xlu0 %450, %v30_v2   ;;  %v32_v6 = vand.u32 127, %v31_v5  ;;  %v29_v10 = vld [vmem:[%s561_s1] sm:$0x3]  ;;  %v195_v14 = vld [vmem:[#allocation2 + $0x8] sm:$0xff]  ;;  %v284_v22 = vld [vmem:[#allocation2 + $0x90] sm:$0xff]  ;;  %s503_s1 = smov [#allocation5]  }
  0x12   :  { %402 = vmatpush3.msk.msra.mxu1 %vm46_vm0, %v41_v3  ;;  %v196_v13 = vld [vmem:[#allocation2 + $0x20] sm:$0xff]  ;;  %v285_v21 = vld [vmem:[#allocation2 + $0xa8] sm:$0xff]  ;;  %v283_v23 = vld [vmem:[#allocation2 + $0x78] sm:$0xff]  ;;  %s367_s21 = sshll.u32 %s503_s1, 4  ;;  %s368_s21 = int_to_ptr.vmem [resolvable:$true] %s367_s21 }
  0x13   :  { %403 = vmatprep.subr.mxu1 %v501_v1  ;;  %425 = vmatpush3.msra.mxu0 %v285_v21  ;;  %v282_v24 = vld [vmem:[#allocation2 + $0x60] sm:$0xff]  ;;  %v281_v25 = vld [vmem:[#allocation2 + $0x48] sm:$0xff]  ;;  %v280_v26 = vld [vmem:[#allocation2 + $0x30] sm:$0xff]  ;;  %s473_s22 = scalar_lea.vmem %s368_s21, 32  ;;  %p478_p6 = scmp.lt.s32.totalorder %s368_s21, %s368_s21 }
  0x14   :  { %404 = vmatpush3.msra.mxu1 %v40_v4  ;;  %426 = vmatprep.subr.mxu0 %v501_v1  ;;  %v279_v27 = vld [vmem:[#allocation2 + $0x18] sm:$0xff]  ;;  %v278_v28 = vld [vmem:[#allocation2] sm:$0xff]  ;;  %v199_v29 = vld [vmem:[#allocation2 + $0x68] ss:$0 sm:$0xff]  ;;  %p474_p5 = scmp.ne.s32.totalorder %s368_s21, %s473_s22  ;;  %p479_p7 = scmp.lt.s32.totalorder %s473_s22, %s473_s22 }
  0x15   :  { %408 = vmatprep.subr.mxu1 %v501_v1  ;;  %427 = vmatpush3.msra.mxu0 %v284_v22 }
  0x16   :  { %428 = vmatprep.subr.mxu0 %v501_v1  ;;  %p480_p8 = por %p479_p7, %p478_p6 }
  0x17   :  { %429 = vmatpush3.msra.mxu0 %v283_v23 }
  0x18   :  { %430 = vmatprep.subr.mxu0 %v501_v1  ;;  %p481_p9 = pnand %p480_p8, %p474_p5 }
  0x19   :  { %431 = vmatpush3.msra.mxu0 %v282_v24 }
  0x1a   :  { %432 = vmatprep.subr.mxu0 %v501_v1 }
  0x1b   :  { %433 = vmatpush3.msra.mxu0 %v281_v25 }
  0x1c   :  { %434 = vmatprep.subr.mxu0 %v501_v1 }
  0x1d   :  { %435 = vmatpush3.msra.mxu0 %v280_v26 }
  0x1e   :  { %436 = vmatprep.subr.mxu0 %v501_v1 }
  0x1f   :  { %437 = vmatpush3.msra.mxu0 %v279_v27 }
  0x20   :  { %438 = vmatprep.subr.mxu0 %v501_v1 }
  0x21   :  { %439 = vmatpush3.msra.mxu0 %v278_v28 }
  0x8c   :  { %v35_v7 = vpop.permute.xlu0 %34 }
  0x8d   :  { %vm36_vm3 = vcmp.eq.s32.totalorder %v32_v6, %v35_v7 }
  0x8e   :  { %v376_v9 = vsel %vm36_vm3, 1.0, %v501_v1 }
  0x8f   :  { %406 = vmatmul.mubr.msk.f32.vlgmr.msra.gmra.mxu1 %vm42_vm2, %v376_v9 }
  0x90   :  { %409 = vmatpush3.msra.mxu1 %v39_v8  ;;  %410 = vmatprep.mubr.msk.f32.mxu1 %vm502_vm1, %v501_v1 }
  0x91   :  { %413 = vmatprep.subr.mxu1 %v501_v1 }
  0x93   :  { %411 = vmatmul.mubr.msk.f32.vlgmr.msra.gmra.mxu1 %vm120_vm4, %v29_v10 }
  0x94   :  { %421 = vmatprep.mubr.msk.f32.mxu1 %vm502_vm1, %v501_v1  ;;  %414 = vmatpush3.msra.mxu1 %v198_v11 }
  0x95   :  { %415 = vmatprep.subr.mxu1 %v501_v1 }
  0x96   :  { %416 = vmatpush3.msra.mxu1 %v197_v12 }
  0x97   :  { %417 = vmatprep.subr.mxu1 %v501_v1 }
  0x98   :  { %418 = vmatpush3.msra.mxu1 %v196_v13 }
  0x99   :  { %419 = vmatprep.subr.mxu1 %v501_v1 }
  0x9a   :  { %420 = vmatpush3.msra.mxu1 %v195_v14 }
 0x14f   :  { %v116_v15 = vpop.f32.mrf.mxu1 }
 0x151   :  { %v407_v16 = vpop.f32.mrf.mxu1 }
 0x153   :  { %v190_v17 = vpop.f32.mrf.mxu1 }
 0x154   :  { %v191_v18 = vadd.f32 %v190_v17, %v116_v15 }
 0x155   :  { %v412_v19 = vpop.f32.mrf.mxu1 }
 0x156   :  { %v194_v20 = vmax.f32 %v191_v18, 0.0 }
 0x158   :  { %422 = vmatmul.mubr.msk.f32.vlgmr.msra.gmra.mxu1 %vm200_vm5, %v194_v20 }
 0x218   :  { %v270_v30 = vpop.f32.mrf.mxu1 }
 0x219   :  { %v271_v31 = vadd.f32 %v270_v30, %v199_v29 }
 0x21a   :  { %v423_v32 = vpop.f32.mrf.mxu1 }
 0x21b   :  { %v274_v33 = vmul.f32 0.5, %v271_v31 }
 0x21d   :  { %451 = vtanh.f32 %v274_v33 }
 0x22a   :  { %v452_v34 = vpop.eup %451 }
 0x22b   :  { %v276_v35 = vmul.f32 0.5, %v452_v34 }
 0x22d   :  { %v277_v36 = vadd.f32 0.5, %v276_v35 }
 0x22f   :  { %441 = vmatmul.mubr.msk.f32.vlgmr.msra.gmra.mxu0 %vm286_vm6, %v277_v36 }
 0x2ef   :  { %v356_v37 = vpop.f32.mrf.mxu0 }
 0x2f0   :  { %360 = vst [vmem:[#allocation5] sm:$0x3] %v356_v37 }
 0x2f1   :  { %v442_v38 = vpop.f32.mrf.mxu0 }
 0x2f2   :  { %484 = shalt.err (!%p481_p9)
}
 0x2f3   :  { %370 = dma.vmem_to_hbm [thread:$0]  %s368_s21, 32, %s563_s3, [#allocation4]  }
 0x2f4   :  { %495 = dma.done.wait [#allocation4], 32  }
 0x2f5   :  { %496 = vsyncadd [#allocation4], 4294967264 }
 0x2f6   :  { %374 = vsyncpa [#allocation3], 1 }
 0x2f7   :  { %375 = vsyncpa [#allocation4], 1 }

</bundles_post_ra>
